<compile_context>
chip_gen: v7x
topology: tpu7x:2x2x1
jax: 0.10.0
libtpu: 0.0.40
codegen_flags: <defaults>
</compile_context>

<pallas_src>
import jax
import jax.numpy as jnp
from jax.experimental import pallas as pl
from jax.experimental.pallas import tpu as pltpu

H1, H2, H3 = 128, 64, 32
LANE = 128
TILE_UNIT = 16  # bf16 sublane packing -> keep batch tiles at multiples of 16


def _round_up(x, m):
    return (x + m - 1) // m * m


def mlp_kernel(x_ref,
               w1_ref, b1_ref,
               w2_ref, b2_ref,
               w3_ref, b3_ref,
               w4_ref, b4_ref,
               o_ref):
    # x arrives as f32; cast to bf16 in-kernel (idle VPU slots, no extra HBM pass).
    x = x_ref[...].astype(w1_ref.dtype)

    # Layer 1: Linear(inp,128) -> ReLU   (BN folded into layer 2's W/b)
    h = jnp.dot(x, w1_ref[...], preferred_element_type=jnp.float32)
    h = jnp.maximum(h + b1_ref[...], 0.0)

    # Layer 2: Linear(128,64) -> ReLU    (BN folded into layer 3's W/b)
    h = jnp.dot(h.astype(w2_ref.dtype), w2_ref[...],
                preferred_element_type=jnp.float32)
    h = jnp.maximum(h + b2_ref[...], 0.0)

    # Layer 3: Linear(64,32) -> ReLU     (BN folded into layer 4's W/b)
    h = jnp.dot(h.astype(w3_ref.dtype), w3_ref[...],
                preferred_element_type=jnp.float32)
    h = jnp.maximum(h + b3_ref[...], 0.0)

    # Layer 4: Linear(32, out_pad)  (out columns zero-padded to 128 lanes)
    out = jnp.dot(h.astype(w4_ref.dtype), w4_ref[...],
                  preferred_element_type=jnp.float32) + b4_ref[...]
    o_ref[...] = out.astype(o_ref.dtype)  # bf16 store -> half the HBM write bytes


def init_params(key, inp_dim, out_dim, eps=1e-5):
    """Synthetic parameters matching the PyTorch module (eval mode).

    Returns the 'raw' tuple:
      (w1,b1,s1,t1, w2,b2,s2,t2, w3,b3,s3,t3, w4,b4)
    where sN/tN are the per-feature BatchNorm scale/shift from running stats.
    """
    dims = [(inp_dim, H1), (H1, H2), (H2, H3), (H3, out_dim)]
    keys = jax.random.split(key, 2 * len(dims) + 2 * 3)
    params = []
    ki = 0
    bn_dims = [H1, H2, H3]
    for li, (din, dout) in enumerate(dims):
        bound = 1.0 / jnp.sqrt(jnp.float32(din))  # PyTorch Linear default init
        w = jax.random.uniform(keys[ki], (din, dout), jnp.float32, -bound, bound); ki += 1
        b = jax.random.uniform(keys[ki], (1, dout), jnp.float32, -bound, bound); ki += 1
        params += [w, b]
        if li < 3:
            d = bn_dims[li]
            gamma = 1.0 + 0.1 * jax.random.normal(keys[ki], (1, d), jnp.float32); ki += 1
            beta = 0.05 * jax.random.normal(keys[ki], (1, d), jnp.float32); ki += 1
            running_mean = jnp.zeros((1, d), jnp.float32)
            running_var = jnp.ones((1, d), jnp.float32)
            scale = gamma / jnp.sqrt(running_var + eps)
            shift = beta - running_mean * scale
            params += [scale, shift]
    return tuple(params)


def fold_params(raw, out_dim, compute_dtype=jnp.bfloat16):
    """Fold post-ReLU BN affine into the following Linear (exact in f32),
    zero-pad the final output dim to 128 lanes, cast weights to bf16."""
    (w1, b1, s1, t1, w2, b2, s2, t2, w3, b3, s3, t3, w4, b4) = raw
    # relu(h)*s + t followed by @W + b  ==  relu(h) @ (s.T * W) + (t @ W + b)
    w2f = s1.T * w2
    b2f = b2 + t1 @ w2
    w3f = s2.T * w3
    b3f = b3 + t2 @ w3
    w4f = s3.T * w4
    b4f = b4 + t3 @ w4
    out_pad = _round_up(out_dim, LANE)
    w4f = jnp.pad(w4f, ((0, 0), (0, out_pad - out_dim)))
    b4f = jnp.pad(b4f, ((0, 0), (0, out_pad - out_dim)))
    cast = lambda w: w.astype(compute_dtype)
    # Weights bf16 (MXU input / half DMA bytes); biases stay f32 (VPU math in f32).
    return (cast(w1), b1, cast(w2f), b2f, cast(w3f), b3f, cast(w4f), b4f)


def _choose_tiling(batch, tile_m_max, min_tiles):
    """Pick (tile_m, pad_batch): biggest tile up to tile_m_max, but keep at least
    `min_tiles` grid steps (when the batch allows it) so the 'parallel' batch
    axis can shard across both v7x TensorCores."""
    pad_batch = _round_up(max(batch, 1), TILE_UNIT)
    if pad_batch >= min_tiles * TILE_UNIT:
        cap = _round_up(pl.cdiv(pad_batch, min_tiles), TILE_UNIT)
        tile_m = min(tile_m_max, cap)
    else:
        tile_m = pad_batch
    pad_batch = _round_up(pad_batch, tile_m)
    return tile_m, pad_batch


def mlp_forward(x, params, out_dim, *, tile_m_max=2048, min_tiles=2):
    """x: (batch, inp_dim) float32; params: output of fold_params."""
    w1, b1, w2, b2, w3, b3, w4, b4 = params
    batch, inp_dim = x.shape
    out_pad = w4.shape[1]

    tile_m, pad_batch = _choose_tiling(batch, tile_m_max, min_tiles)
    grid_m = pad_batch // tile_m

    # x stays f32 (cast happens in-kernel); pad batch rows only if necessary.
    xp = x if pad_batch == batch else jnp.pad(x, ((0, pad_batch - batch), (0, 0)))

    flops = 2 * pad_batch * (inp_dim * H1 + H1 * H2 + H2 * H3 + H3 * out_pad)
    bytes_accessed = (xp.size * xp.dtype.itemsize
                      + sum(int(p.size) * p.dtype.itemsize for p in params)
                      + pad_batch * out_pad * 2)  # bf16 output
    cost = pl.CostEstimate(flops=int(flops), transcendentals=0,
                           bytes_accessed=int(bytes_accessed))

    const = lambda i: (0, 0)  # weights/biases resident in VMEM across the grid
    in_specs = [
        pl.BlockSpec((tile_m, inp_dim), lambda i: (i, 0)),
        pl.BlockSpec(w1.shape, const), pl.BlockSpec(b1.shape, const),
        pl.BlockSpec(w2.shape, const), pl.BlockSpec(b2.shape, const),
        pl.BlockSpec(w3.shape, const), pl.BlockSpec(b3.shape, const),
        pl.BlockSpec(w4.shape, const), pl.BlockSpec(b4.shape, const),
    ]

    out = pl.pallas_call(
        mlp_kernel,
        out_shape=jax.ShapeDtypeStruct((pad_batch, out_pad), jnp.bfloat16),
        grid=(grid_m,),
        in_specs=in_specs,
        out_specs=pl.BlockSpec((tile_m, out_pad), lambda i: (i, 0)),
        compiler_params=pltpu.CompilerParams(
            dimension_semantics=("parallel",),
            vmem_limit_bytes=32 * 1024 * 1024),
        cost_estimate=cost,
    )(xp, w1, b1, w2, b2, w3, b3, w4, b4)

    # Slice off lane/batch padding; upcast to f32 for callers that expect it.
    return out[:batch, :out_dim].astype(jnp.float32)


def mlp_reference(x, raw):
    """Plain-JAX f32 reference with the ORIGINAL (unfolded) eval-mode params."""
    (w1, b1, s1, t1, w2, b2, s2, t2, w3, b3, s3, t3, w4, b4) = raw
    h = jnp.maximum(x @ w1 + b1, 0.0) * s1 + t1
    h = jnp.maximum(h @ w2 + b2, 0.0) * s2 + t2
    h = jnp.maximum(h @ w3 + b3, 0.0) * s3 + t3
    return h @ w4 + b4


if __name__ == "__main__":
    inp_dim, out_dim, batch = 16, 10, 8
    key = jax.random.PRNGKey(0)
    kx, kp = jax.random.split(key)
    x = jax.random.normal(kx, (batch, inp_dim), jnp.float32)

    raw = init_params(kp, inp_dim, out_dim)
    params = fold_params(raw, out_dim)

    y = mlp_forward(x, params, out_dim)
    y = jax.block_until_ready(y)

    y_ref = mlp_reference(x, raw)
    assert y.shape == (batch, out_dim)
    # bf16 weights/intermediates/output store -> loosened tolerance vs f32 ref.
    assert jnp.allclose(y, y_ref, atol=5e-2, rtol=5e-2), (
        "mismatch vs reference, max abs diff = "
        f"{float(jnp.max(jnp.abs(y - y_ref)))}")
    print("KERNEL_OK")
</pallas_src>

<mosaic_0001>
module attributes {stable_mosaic.version = 11 : i64} {
  func.func @mlp_kernel(%arg0: i32, %arg1: memref<16x16xf32, #tpu.memory_space<vmem>>, %arg2: memref<16x128xbf16, #tpu.memory_space<vmem>>, %arg3: memref<1x128xf32, #tpu.memory_space<vmem>>, %arg4: memref<128x64xbf16, #tpu.memory_space<vmem>>, %arg5: memref<1x64xf32, #tpu.memory_space<vmem>>, %arg6: memref<64x32xbf16, #tpu.memory_space<vmem>>, %arg7: memref<1x32xf32, #tpu.memory_space<vmem>>, %arg8: memref<32x128xbf16, #tpu.memory_space<vmem>>, %arg9: memref<1x128xf32, #tpu.memory_space<vmem>>, %arg10: memref<16x128xbf16, #tpu.memory_space<vmem>>) attributes {dimension_semantics = [#tpu.dimension_semantics<parallel>], iteration_bounds = array<i64: 1>, scalar_prefetch = 0 : i64, scratch_operands = 0 : i64, tpu.core_type = #tpu.core_type<tc>, window_params = [{transform_indices = @transform_0, window_bounds = array<i64: 16, 16>}, {pipeline_mode = #tpu.pipeline_mode<synchronous>, transform_indices = @transform_1, window_bounds = array<i64: 16, 128>}, {pipeline_mode = #tpu.pipeline_mode<synchronous>, transform_indices = @transform_2, window_bounds = array<i64: 1, 128>}, {pipeline_mode = #tpu.pipeline_mode<synchronous>, transform_indices = @transform_3, window_bounds = array<i64: 128, 64>}, {pipeline_mode = #tpu.pipeline_mode<synchronous>, transform_indices = @transform_4, window_bounds = array<i64: 1, 64>}, {pipeline_mode = #tpu.pipeline_mode<synchronous>, transform_indices = @transform_5, window_bounds = array<i64: 64, 32>}, {pipeline_mode = #tpu.pipeline_mode<synchronous>, transform_indices = @transform_6, window_bounds = array<i64: 1, 32>}, {pipeline_mode = #tpu.pipeline_mode<synchronous>, transform_indices = @transform_7, window_bounds = array<i64: 32, 128>}, {pipeline_mode = #tpu.pipeline_mode<synchronous>, transform_indices = @transform_8, window_bounds = array<i64: 1, 128>}, {transform_indices = @transform_9, window_bounds = array<i64: 16, 128>}]} {
    %c0 = arith.constant 0 : index
    %c0_0 = arith.constant 0 : index
    %0 = vector.load %arg1[%c0, %c0_0] : memref<16x16xf32, #tpu.memory_space<vmem>>, vector<16x16xf32>
    %1 = arith.truncf %0 : vector<16x16xf32> to vector<16x16xbf16>
    %c0_1 = arith.constant 0 : index
    %c0_2 = arith.constant 0 : index
    %2 = vector.load %arg2[%c0_1, %c0_2] : memref<16x128xbf16, #tpu.memory_space<vmem>>, vector<16x128xbf16>
    %cst = arith.constant dense<0.000000e+00> : vector<16x128xf32>
    %3 = tpu.matmul %1, %2, %cst {dimension_numbers = #tpu.dot_dimension_numbers<[1], [0], [0], [1], [0, 0, 1, 1], [], []>} : vector<16x16xbf16>, vector<16x128xbf16>, vector<16x128xf32> -> vector<16x128xf32>
    %c0_3 = arith.constant 0 : index
    %c0_4 = arith.constant 0 : index
    %4 = vector.load %arg3[%c0_3, %c0_4] : memref<1x128xf32, #tpu.memory_space<vmem>>, vector<1x128xf32>
    %5 = vector.broadcast %4 : vector<1x128xf32> to vector<16x128xf32>
    %6 = arith.addf %3, %5 : vector<16x128xf32>
    %cst_5 = arith.constant 0.000000e+00 : f32
    %7 = vector.broadcast %cst_5 : f32 to vector<16x128xf32>
    %8 = arith.maximumf %6, %7 : vector<16x128xf32>
    %9 = arith.truncf %8 : vector<16x128xf32> to vector<16x128xbf16>
    %c0_6 = arith.constant 0 : index
    %c0_7 = arith.constant 0 : index
    %10 = vector.load %arg4[%c0_6, %c0_7] : memref<128x64xbf16, #tpu.memory_space<vmem>>, vector<128x64xbf16>
    %cst_8 = arith.constant dense<0.000000e+00> : vector<16x64xf32>
    %11 = tpu.matmul %9, %10, %cst_8 {dimension_numbers = #tpu.dot_dimension_numbers<[1], [0], [0], [1], [0, 0, 1, 1], [], []>} : vector<16x128xbf16>, vector<128x64xbf16>, vector<16x64xf32> -> vector<16x64xf32>
    %c0_9 = arith.constant 0 : index
    %c0_10 = arith.constant 0 : index
    %12 = vector.load %arg5[%c0_9, %c0_10] : memref<1x64xf32, #tpu.memory_space<vmem>>, vector<1x64xf32>
    %13 = vector.broadcast %12 : vector<1x64xf32> to vector<16x64xf32>
    %14 = arith.addf %11, %13 : vector<16x64xf32>
    %cst_11 = arith.constant 0.000000e+00 : f32
    %15 = vector.broadcast %cst_11 : f32 to vector<16x64xf32>
    %16 = arith.maximumf %14, %15 : vector<16x64xf32>
    %17 = arith.truncf %16 : vector<16x64xf32> to vector<16x64xbf16>
    %c0_12 = arith.constant 0 : index
    %c0_13 = arith.constant 0 : index
    %18 = vector.load %arg6[%c0_12, %c0_13] : memref<64x32xbf16, #tpu.memory_space<vmem>>, vector<64x32xbf16>
    %cst_14 = arith.constant dense<0.000000e+00> : vector<16x32xf32>
    %19 = tpu.matmul %17, %18, %cst_14 {dimension_numbers = #tpu.dot_dimension_numbers<[1], [0], [0], [1], [0, 0, 1, 1], [], []>} : vector<16x64xbf16>, vector<64x32xbf16>, vector<16x32xf32> -> vector<16x32xf32>
    %c0_15 = arith.constant 0 : index
    %c0_16 = arith.constant 0 : index
    %20 = vector.load %arg7[%c0_15, %c0_16] : memref<1x32xf32, #tpu.memory_space<vmem>>, vector<1x32xf32>
    %21 = vector.broadcast %20 : vector<1x32xf32> to vector<16x32xf32>
    %22 = arith.addf %19, %21 : vector<16x32xf32>
    %cst_17 = arith.constant 0.000000e+00 : f32
    %23 = vector.broadcast %cst_17 : f32 to vector<16x32xf32>
    %24 = arith.maximumf %22, %23 : vector<16x32xf32>
    %25 = arith.truncf %24 : vector<16x32xf32> to vector<16x32xbf16>
    %c0_18 = arith.constant 0 : index
    %c0_19 = arith.constant 0 : index
    %26 = vector.load %arg8[%c0_18, %c0_19] : memref<32x128xbf16, #tpu.memory_space<vmem>>, vector<32x128xbf16>
    %cst_20 = arith.constant dense<0.000000e+00> : vector<16x128xf32>
    %27 = tpu.matmul %25, %26, %cst_20 {dimension_numbers = #tpu.dot_dimension_numbers<[1], [0], [0], [1], [0, 0, 1, 1], [], []>} : vector<16x32xbf16>, vector<32x128xbf16>, vector<16x128xf32> -> vector<16x128xf32>
    %c0_21 = arith.constant 0 : index
    %c0_22 = arith.constant 0 : index
    %28 = vector.load %arg9[%c0_21, %c0_22] : memref<1x128xf32, #tpu.memory_space<vmem>>, vector<1x128xf32>
    %29 = vector.broadcast %28 : vector<1x128xf32> to vector<16x128xf32>
    %30 = arith.addf %27, %29 : vector<16x128xf32>
    %31 = arith.truncf %30 : vector<16x128xf32> to vector<16x128xbf16>
    %c0_23 = arith.constant 0 : index
    %c0_24 = arith.constant 0 : index
    %32 = vector.load %arg10[%c0_23, %c0_24] : memref<16x128xbf16, #tpu.memory_space<vmem>>, vector<16x128xbf16>
    tpu.vector_store %arg10[%c0_23, %c0_24], %31 {strides = array<i32>} : memref<16x128xbf16, #tpu.memory_space<vmem>>, vector<16x128xbf16>,
    return
  }
  func.func @transform_0(%arg0: i32) -> (i32, i32) {
    %c0_i32 = arith.constant 0 : i32
    %c0_i32_0 = arith.constant 0 : i32
    return %arg0, %c0_i32 : i32, i32
  }
  func.func @transform_1(%arg0: i32) -> (i32, i32) {
    %c0_i32 = arith.constant 0 : i32
    %c0_i32_0 = arith.constant 0 : i32
    %c0_i32_1 = arith.constant 0 : i32
    return %c0_i32, %c0_i32_0 : i32, i32
  }
  func.func @transform_2(%arg0: i32) -> (i32, i32) {
    %c0_i32 = arith.constant 0 : i32
    %c0_i32_0 = arith.constant 0 : i32
    %c0_i32_1 = arith.constant 0 : i32
    return %c0_i32, %c0_i32_0 : i32, i32
  }
  func.func @transform_3(%arg0: i32) -> (i32, i32) {
    %c0_i32 = arith.constant 0 : i32
    %c0_i32_0 = arith.constant 0 : i32
    %c0_i32_1 = arith.constant 0 : i32
    return %c0_i32, %c0_i32_0 : i32, i32
  }
  func.func @transform_4(%arg0: i32) -> (i32, i32) {
    %c0_i32 = arith.constant 0 : i32
    %c0_i32_0 = arith.constant 0 : i32
    %c0_i32_1 = arith.constant 0 : i32
    return %c0_i32, %c0_i32_0 : i32, i32
  }
  func.func @transform_5(%arg0: i32) -> (i32, i32) {
    %c0_i32 = arith.constant 0 : i32
    %c0_i32_0 = arith.constant 0 : i32
    %c0_i32_1 = arith.constant 0 : i32
    return %c0_i32, %c0_i32_0 : i32, i32
  }
  func.func @transform_6(%arg0: i32) -> (i32, i32) {
    %c0_i32 = arith.constant 0 : i32
    %c0_i32_0 = arith.constant 0 : i32
    %c0_i32_1 = arith.constant 0 : i32
    return %c0_i32, %c0_i32_0 : i32, i32
  }
  func.func @transform_7(%arg0: i32) -> (i32, i32) {
    %c0_i32 = arith.constant 0 : i32
    %c0_i32_0 = arith.constant 0 : i32
    %c0_i32_1 = arith.constant 0 : i32
    return %c0_i32, %c0_i32_0 : i32, i32
  }
  func.func @transform_8(%arg0: i32) -> (i32, i32) {
    %c0_i32 = arith.constant 0 : i32
    %c0_i32_0 = arith.constant 0 : i32
    %c0_i32_1 = arith.constant 0 : i32
    return %c0_i32, %c0_i32_0 : i32, i32
  }
  func.func @transform_9(%arg0: i32) -> (i32, i32) {
    %c0_i32 = arith.constant 0 : i32
    %c0_i32_0 = arith.constant 0 : i32
    return %arg0, %c0_i32 : i32, i32
  }
}

</mosaic_0001>

<bundles_post_ra>
// kernel: tpu_custom_call.1
= control target key start
LH: loop header
LB: loop body
LE: loop exit
PB: predicated region body
PF: predicated region fallthrough
CT: control target
= control target key end

     0   :  { %v536_v1 = vmov 0.0   ;;  %vm537_vm0 = vmmov 0   ;;  %vm52_vm1 = vcmask 130048   ;;  %s689_s0 = inlined_call_operand.vmem [shape: f32[16,16], index: 0, kind: input, shape index: {}]   ;;  %s690_s1 = inlined_call_operand.vmem [shape: bf16[16,128], index: 1, kind: input, shape index: {}]   ;;  %s691_s2 = inlined_call_operand.vmem [shape: f32[1,128], index: 2, kind: input, shape index: {}]   ;;  %s692_s3 = inlined_call_operand.vmem [shape: bf16[128,64], index: 3, kind: input, shape index: {}]   ;;  %s693_s4 = inlined_call_operand.vmem [shape: f32[1,64], index: 4, kind: input, shape index: {}]   ;;  %s694_s5 = inlined_call_operand.vmem [shape: bf16[64,32], index: 5, kind: input, shape index: {}]   ;;  %s695_s6 = inlined_call_operand.vmem [shape: f32[1,32], index: 6, kind: input, shape index: {}]   ;;  %s696_s7 = inlined_call_operand.vmem [shape: bf16[32,128], index: 7, kind: input, shape index: {}]   ;;  %s697_s8 = inlined_call_operand.vmem [shape: f32[1,128], index: 8, kind: input, shape index: {}]   ;;  %s698_s9 = inlined_call_operand.hbm [shape: bf16[16,128], index: 9, kind: output, shape index: {}]  }
   0x1   :  { %v497_v0 = vld [vmem:[%s690_s1] sm:$0xff]   ;;  %446 = vmatprep.subr.bf16.mxu0 %v536_v1  ;;  %v35_v3 = vld [vmem:[%s689_s0 + $0x8] sm:$0xff]  ;;  %452 = vmatprep.subr.bf16.mxu1 %v536_v1  ;;  %v500_v7 = vld [vmem:[%s692_s3 + $0x10] sm:$0xff]  }
   0x2   :  { %v34_v2 = vld [vmem:[%s689_s0] sm:$0xff]  ;;  %447 = vmatpush3.bf16.msra.mxu0 %v497_v0  ;;  %448 = vmatprep.mubr.msk.bf16.mxu0 %vm537_vm0, %v536_v1  ;;  %v499_v6 = vld [vmem:[%s692_s3 + $0x8] sm:$0xff]   ;;  %v501_v8 = vld [vmem:[%s692_s3 + $0x18] sm:$0xff]  }
   0x3   :  { %v36_v4 = vpack.c.bf16 %v35_v3, %v34_v2  ;;  %v498_v5 = vld [vmem:[%s692_s3] sm:$0xff]   ;;  %468 = vmatprep.mubr.msk.bf16.mxu1 %vm537_vm0, %v536_v1  ;;  %472 = vmatprep.subr.bf16.mxu0 %v536_v1 }
   0x4   :  { %453 = vmatpush3.bf16.msra.mxu1 %v498_v5 }
   0x5   :  { %449 = vmatmul.mubr.msk.bf16.vlgmr.msra.gmra.mrb[0].mxu0 %vm52_vm1, %v36_v4  ;;  %454 = vmatprep.subr.bf16.mxu1 %v536_v1 }
   0x6   :  { %480 = vmatprep.mubr.msk.bf16.mxu0 %vm537_vm0, %v536_v1 }
   0x8   :  { %455 = vmatpush3.bf16.msra.mxu1 %v499_v6 }
   0x9   :  { %456 = vmatprep.subr.bf16.mxu1 %v536_v1 }
   0xc   :  { %457 = vmatpush3.bf16.msra.mxu1 %v500_v7 }
   0xd   :  { %458 = vmatprep.subr.bf16.mxu1 %v536_v1 }
   0xe   :  { %14 = vsyncpa [#allocation3], 0  ;;  %v502_v9 = vld [vmem:[%s692_s3 + $0x20] sm:$0xff]   ;;  %v503_v10 = vld [vmem:[%s692_s3 + $0x28] sm:$0xff]   ;;  %vm254_vm2 = vcmask 523264   ;;  %vm325_vm3 = vcmask 261120  }
   0xf   :  { %v504_v11 = vld [vmem:[%s692_s3 + $0x30] sm:$0xff]   ;;  %v505_v12 = vld [vmem:[%s692_s3 + $0x38] sm:$0xff]   ;;  %v506_v13 = vld [vmem:[%s694_s5] sm:$0xff]  }
  0x10   :  { %459 = vmatpush3.bf16.msra.mxu1 %v501_v8  ;;  %473 = vmatpush3.bf16.msra.mxu0 %v506_v13  ;;  %v507_v14 = vld [vmem:[%s694_s5 + $0x8] sm:$0xff]   ;;  %v396_v15 = vld [vmem:[%s691_s2] ss:$0 sm:$0xff]  ;;  %v508_v25 = vld [vmem:[%s694_s5 + $0x10] sm:$0xff]  }
  0x11   :  { %460 = vmatprep.subr.bf16.mxu1 %v536_v1  ;;  %474 = vmatprep.subr.bf16.mxu0 %v536_v1  ;;  %v509_v26 = vld [vmem:[%s694_s5 + $0x18] sm:$0xff]   ;;  %v399_v27 = vld [vmem:[%s693_s4] ss:$0 sm:$0xff]  ;;  %v511_v38 = vld [vmem:[%s696_s7 + $0x8] sm:$0xff]  }
  0x12   :  { %v510_v37 = vld [vmem:[%s696_s7] sm:$0xff]   ;;  %s538_s7 = smov [#allocation2]  }
  0x13   :  { %v408_v39 = vld [vmem:[%s695_s6] ss:$0 sm:$0xff]  ;;  %s385_s22 = sshll.u32 %s538_s7, 4  ;;  %s386_s22 = int_to_ptr.vmem [resolvable:$true] %s385_s22 }
  0x14   :  { %461 = vmatpush3.bf16.msra.mxu1 %v502_v9  ;;  %475 = vmatpush3.bf16.msra.mxu0 %v507_v14  ;;  %v414_v49 = vld [vmem:[%s697_s8] ss:$0 sm:$0xff]  ;;  %s512_s6 = scalar_lea.vmem %s386_s22, 128  ;;  %p517_p1 = scmp.lt.s32.totalorder %s386_s22, %s386_s22 }
  0x15   :  { %462 = vmatprep.subr.bf16.mxu1 %v536_v1  ;;  %476 = vmatprep.subr.bf16.mxu0 %v536_v1  ;;  %p513_p0 = scmp.ne.s32.totalorder %s386_s22, %s512_s6  ;;  %p518_p2 = scmp.lt.s32.totalorder %s512_s6, %s512_s6 }
  0x17   :  { %p519_p3 = por %p518_p2, %p517_p1 }
  0x18   :  { %463 = vmatpush3.bf16.msra.mxu1 %v503_v10  ;;  %477 = vmatpush3.bf16.msra.mxu0 %v508_v25 }
  0x19   :  { %464 = vmatprep.subr.bf16.mxu1 %v536_v1  ;;  %478 = vmatprep.subr.bf16.mxu0 %v536_v1  ;;  %p520_p4 = pnand %p519_p3, %p513_p0 }
  0x1c   :  { %465 = vmatpush3.bf16.msra.mxu1 %v504_v11  ;;  %479 = vmatpush3.bf16.msra.mxu0 %v509_v26 }
  0x1d   :  { %466 = vmatprep.subr.bf16.mxu1 %v536_v1  ;;  %484 = vmatprep.subr.bf16.mxu0 %v536_v1 }
  0x20   :  { %467 = vmatpush3.bf16.msra.mxu1 %v505_v12 }
  0xd8   :  { %v90_v16 = vpop.f32.mrb[0].mxu0 }
  0xd9   :  { %v91_v17 = vadd.f32 %v396_v15, %v90_v16  ;;  %v450_v18 = vpop.f32.mrb[1].mxu0 }
  0xda   :  { %v93_v19 = vpop.f32.mrb[2].mxu0 }
  0xdb   :  { %v94_v20 = vadd.f32 %v396_v15, %v93_v19  ;;  %v451_v21 = vpop.f32.mrb[3].mxu0  ;;  %v97_v22 = vmax.f32 %v91_v17, 0.0 }
  0xdd   :  { %v98_v23 = vmax.f32 %v94_v20, 0.0 }
  0xdf   :  { %v99_v24 = vpack.c.bf16 %v98_v23, %v97_v22 }
  0xe1   :  { %469 = vmatmul.mubr.bf16.vlgmr.msra.gmra.mrb[0].mxu1 %v99_v24 }
 0x1b4   :  { %v205_v28 = vpop.f32.mrb[0].mxu1 }
 0x1b5   :  { %v206_v29 = vadd.f32 %v399_v27, %v205_v28  ;;  %v470_v30 = vpop.f32.mrb[1].mxu1 }
 0x1b6   :  { %v208_v31 = vpop.f32.mrb[2].mxu1 }
 0x1b7   :  { %v209_v32 = vadd.f32 %v399_v27, %v208_v31  ;;  %v471_v33 = vpop.f32.mrb[3].mxu1  ;;  %v212_v34 = vmax.f32 %v206_v29, 0.0 }
 0x1b9   :  { %v213_v35 = vmax.f32 %v209_v32, 0.0 }
 0x1bb   :  { %v214_v36 = vpack.c.bf16 %v213_v35, %v212_v34 }
 0x1bd   :  { %481 = vmatmul.mubr.msk.bf16.vlgmr.msra.gmra.mrb[4].mxu0 %vm254_vm2, %v214_v36 }
 0x1be   :  { %488 = vmatprep.mubr.msk.bf16.mxu0 %vm537_vm0, %v536_v1  ;;  %485 = vmatpush3.bf16.msra.mxu0 %v510_v37 }
 0x1bf   :  { %486 = vmatprep.subr.bf16.mxu0 %v536_v1 }
 0x1c2   :  { %487 = vmatpush3.bf16.msra.mxu0 %v511_v38 }
 0x290   :  { %v292_v40 = vpop.f32.mrb[4].mxu0 }
 0x291   :  { %v293_v41 = vadd.f32 %v408_v39, %v292_v40  ;;  %v482_v42 = vpop.f32.mrb[5].mxu0 }
 0x292   :  { %v295_v43 = vpop.f32.mrb[6].mxu0 }
 0x293   :  { %v296_v44 = vadd.f32 %v408_v39, %v295_v43  ;;  %v483_v45 = vpop.f32.mrb[7].mxu0  ;;  %v299_v46 = vmax.f32 %v293_v41, 0.0 }
 0x295   :  { %v300_v47 = vmax.f32 %v296_v44, 0.0 }
 0x297   :  { %v301_v48 = vpack.c.bf16 %v300_v47, %v299_v46 }
 0x299   :  { %489 = vmatmul.mubr.msk.bf16.vlgmr.msra.gmra.mrb[8].mxu0 %vm325_vm3, %v301_v48 }
 0x36c   :  { %v363_v50 = vpop.f32.mrb[8].mxu0 }
 0x36d   :  { %v490_v51 = vpop.f32.mrb[9].mxu0  ;;  %v364_v53 = vadd.f32 %v414_v49, %v363_v50 }
 0x36e   :  { %v366_v52 = vpop.f32.mrb[10].mxu0 }
 0x36f   :  { %v367_v54 = vadd.f32 %v414_v49, %v366_v52  ;;  %v491_v55 = vpop.f32.mrb[11].mxu0 }
 0x371   :  { %v425_v56 = vpack.c.bf16 %v367_v54, %v364_v53 }
 0x373   :  { %426 = vst [vmem:[#allocation2] sm:$0xff] %v425_v56  }
 0x374   :  { %523 = shalt.err (!%p520_p4)
}
 0x375   :  { %s524_s24 = scalar_lea.hbm %s698_s9, 128 }
 0x376   :  { %p525_p5 = scmp.ne.s32.totalorder %s698_s9, %s524_s24  ;;  %p528_p6 = scmp.lt.u32.totalorder %s524_s24, %s698_s9 }
 0x378   :  { %p530_p7 = pnand %p528_p6, %p525_p5 }
 0x37a   :  { %533 = shalt.err (!%p530_p7)
}
 0x37b   :  { %s539_s29 = smov 64   ;;  %s540_s30 = smov 4  }
 0x37c   :  { %391 = dma.vmem_to_hbm [thread:$0]  %s386_s22, 128, %s698_s9, [#allocation3], %s539_s29, %s539_s29, %s540_s30  }
 0x37d   :  { %534 = dma.done.wait [#allocation3], 128  }
 0x37e   :  { %535 = vsyncadd [#allocation3], 4294967168 }
 0x37f   :  { %395 = vsyncpa [#allocation3], 1 }

</bundles_post_ra>
